<compile_context>
chip_gen: v6e
topology: v6e:2x2x1
jax: 0.10.0
libtpu: 0.0.40
codegen_flags: <defaults>
</compile_context>

<pallas_src>
import functools

import jax
import jax.numpy as jnp
from jax.experimental import pallas as pl
from jax.experimental.pallas import tpu as pltpu

LANES = 128
MAX_TILE_ROWS = 4096                 # (4096,128) f32 block = 2 MiB -> ~90% HBM roofline
ACC_ROWS = 8                         # accumulator = one f32 vreg (8, 128)
VMEM_LIMIT_BYTES = 40 * 1024 * 1024  # explicit budget: safe on v5e/v6e (128 MiB) and v7x (64 MiB)


def _mspe_kernel(pred_ref, targ_ref, out_ref, *, eps, tile_rows, acc_rows,
                 valid_rows_last):
    """Accumulate sum(((p - t) / (t + eps))**2) of this block into out_ref.

    out_ref is a resident (acc_rows, 128) f32 accumulator (a single vreg when
    acc_rows == 8); the tiny cross-lane reduce + 1/n happens once in XLA.
    """
    j = pl.program_id(0)

    @pl.when(j == 0)
    def _init():
        out_ref[...] = jnp.zeros_like(out_ref)

    # In-kernel cast: free for f32, avoids an HBM round trip for bf16 inputs.
    p = pred_ref[...].astype(jnp.float32)
    t = targ_ref[...].astype(jnp.float32)

    def accumulate(row_mask):
        num = p - t
        den = t + eps
        if row_mask is not None:
            # Mask BEFORE the reciprocal so garbage rows of a partial boundary
            # block can never poison the accumulator with inf/nan.
            num = jnp.where(row_mask, num, 0.0)
            den = jnp.where(row_mask, den, 1.0)
        perc = num * pl.reciprocal(den, approx=False)   # EUP slot, not VALU divide
        sq = perc * perc
        # Layout-preserving split on (8,128) vreg tiles; the axis-0 sum is pure
        # VPU adds into the single resident accumulator slab.
        out_ref[...] += jnp.sum(
            sq.reshape(tile_rows // acc_rows, acc_rows, LANES), axis=0)

    if valid_rows_last == tile_rows:
        # Every block (including the last) is full: no masking anywhere.
        accumulate(None)
    else:
        last = pl.num_programs(0) - 1

        @pl.when(j != last)             # fully interior blocks: no mask cost
        def _interior():
            accumulate(None)

        @pl.when(j == last)             # ragged last block: static row mask
        def _tail():
            # valid_rows_last is a static Python int <= tile_rows (<= 4096),
            # so this comparison cannot overflow int32 regardless of total n.
            rid = jax.lax.broadcasted_iota(jnp.int32, (tile_rows, LANES), 0)
            accumulate(rid < valid_rows_last)


def _sumsq_xla(p, t, eps):
    p = p.astype(jnp.float32)
    t = t.astype(jnp.float32)
    perc = (p - t) / (t + eps)
    return jnp.sum(perc * perc)


def mspe_loss(pred, target, eps: float = 1e-6):
    assert pred.shape == target.shape, "pred/target shapes must match"
    n = pred.size
    assert n > 0

    pred_f = pred.reshape(-1)
    targ_f = target.reshape(-1)

    n_aligned = (n // LANES) * LANES
    if n_aligned == 0:
        # Fewer than 128 elements: a kernel would be pure per-step overhead.
        return _sumsq_xla(pred_f, targ_f, eps) / n

    if n_aligned == n:
        pred_main, targ_main = pred_f, targ_f          # common case: no copy
    else:
        # Lane-aligned prefix only (cheaper than padding both full arrays);
        # the <128-element remainder is folded in with plain XLA below.
        pred_main = pred_f[:n_aligned]
        targ_main = targ_f[:n_aligned]

    rows = n_aligned // LANES
    pred2d = pred_main.reshape(rows, LANES)
    targ2d = targ_main.reshape(rows, LANES)

    # Row alignment follows sublane packing of the narrower input dtype
    # (8 rows for 32-bit, 16 for bf16, 32 for int8/fp8).
    itemsize = min(pred.dtype.itemsize, target.dtype.itemsize)
    row_align = 8 * max(1, 4 // itemsize)
    if rows <= row_align:
        tile_rows = rows
    elif rows < MAX_TILE_ROWS:
        tile_rows = (rows // row_align) * row_align
    else:
        tile_rows = MAX_TILE_ROWS

    acc_rows = ACC_ROWS if tile_rows % ACC_ROWS == 0 else tile_rows
    total_blocks = pl.cdiv(rows, tile_rows)
    valid_rows_last = rows - (total_blocks - 1) * tile_rows

    kernel = functools.partial(
        _mspe_kernel, eps=eps, tile_rows=tile_rows, acc_rows=acc_rows,
        valid_rows_last=valid_rows_last)

    cost = pl.CostEstimate(
        flops=6 * n_aligned,
        transcendentals=n_aligned,
        bytes_accessed=(n_aligned * (pred.dtype.itemsize + target.dtype.itemsize)
                        + acc_rows * LANES * 4))

    # TODO(synk): on v7x (2 TensorCores/chip) add a leading CORE_PARALLEL grid
    # axis to shard the stream across both cores; plain "parallel" does not,
    # and v5e/v6e are single-TC so a split only adds phantom-block work.
    partial = pl.pallas_call(
        kernel,
        out_shape=jax.ShapeDtypeStruct((acc_rows, LANES), jnp.float32),
        grid_spec=pltpu.PrefetchScalarGridSpec(
            num_scalar_prefetch=0,
            grid=(total_blocks,),
            in_specs=[
                pl.BlockSpec((tile_rows, LANES), lambda j: (j, 0)),
                pl.BlockSpec((tile_rows, LANES), lambda j: (j, 0)),
            ],
            out_specs=pl.BlockSpec((acc_rows, LANES), lambda j: (0, 0)),
        ),
        compiler_params=pltpu.CompilerParams(
            dimension_semantics=("arbitrary",),
            vmem_limit_bytes=VMEM_LIMIT_BYTES),
        cost_estimate=cost,
    )(pred2d, targ2d)

    total = jnp.sum(partial)                  # tiny (<= 8x128) XLA epilogue
    if n_aligned != n:
        total = total + _sumsq_xla(pred_f[n_aligned:], targ_f[n_aligned:], eps)
    return total / n


if __name__ == "__main__":
    key = jax.random.PRNGKey(0)
    k1, k2, k3, k4 = jax.random.split(key, 4)
    eps = 1e-6

    # Case 1: typical NCHW regression output (lane-aligned numel, no copies).
    shape = (2, 4, 16, 16)
    pred = jax.random.normal(k1, shape, dtype=jnp.float32)
    target = jax.random.uniform(k2, shape, dtype=jnp.float32,
                                minval=0.5, maxval=1.5)
    loss = mspe_loss(pred, target)
    jax.block_until_ready(loss)
    ref = jnp.mean(((pred - target) / (target + eps)) ** 2)
    assert jnp.allclose(loss, ref, rtol=1e-5, atol=1e-6), (loss, ref)

    # Case 2: odd numel exercising the aligned-prefix + ragged-row-mask +
    # XLA-remainder path.
    shape2 = (3, 5, 7, 11)
    pred2 = jax.random.normal(k3, shape2, dtype=jnp.float32)
    target2 = jax.random.uniform(k4, shape2, dtype=jnp.float32,
                                 minval=0.5, maxval=1.5)
    loss2 = mspe_loss(pred2, target2)
    jax.block_until_ready(loss2)
    ref2 = jnp.mean(((pred2 - target2) / (target2 + eps)) ** 2)
    assert jnp.allclose(loss2, ref2, rtol=1e-5, atol=1e-6), (loss2, ref2)

    print("KERNEL_OK")
</pallas_src>

<mosaic_0001>
module attributes {stable_mosaic.version = 11 : i64} {
  func.func @_mspe_kernel(%arg0: i32, %arg1: memref<16x128xf32, #tpu.memory_space<vmem>>, %arg2: memref<16x128xf32, #tpu.memory_space<vmem>>, %arg3: memref<8x128xf32, #tpu.memory_space<vmem>>) attributes {dimension_semantics = [#tpu.dimension_semantics<arbitrary>], iteration_bounds = array<i64: 1>, scalar_prefetch = 0 : i64, scratch_operands = 0 : i64, tpu.core_type = #tpu.core_type<tc>, window_params = [{transform_indices = @transform_0, window_bounds = array<i64: 16, 128>}, {transform_indices = @transform_1, window_bounds = array<i64: 16, 128>}, {pipeline_mode = #tpu.pipeline_mode<synchronous>, transform_indices = @transform_2, window_bounds = array<i64: 8, 128>}]} {
    %c0_i32 = arith.constant 0 : i32
    %0 = arith.cmpi eq, %arg0, %c0_i32 : i32
    %1 = arith.extui %0 : i1 to i32
    %c0_i32_0 = arith.constant 0 : i32
    %2 = arith.cmpi ne, %1, %c0_i32_0 : i32
    scf.if %2 {
      %cst_9 = arith.constant 0.000000e+00 : f32
      %16 = vector.broadcast %cst_9 : f32 to vector<8x128xf32>
      %c0_10 = arith.constant 0 : index
      %c0_11 = arith.constant 0 : index
      %17 = vector.load %arg3[%c0_10, %c0_11] : memref<8x128xf32, #tpu.memory_space<vmem>>, vector<8x128xf32>
      tpu.vector_store %arg3[%c0_10, %c0_11], %16 {strides = array<i32>} : memref<8x128xf32, #tpu.memory_space<vmem>>, vector<8x128xf32>,
    } else {
    }
    %c0 = arith.constant 0 : index
    %c0_1 = arith.constant 0 : index
    %3 = vector.load %arg1[%c0, %c0_1] : memref<16x128xf32, #tpu.memory_space<vmem>>, vector<16x128xf32>
    %c0_2 = arith.constant 0 : index
    %c0_3 = arith.constant 0 : index
    %4 = vector.load %arg2[%c0_2, %c0_3] : memref<16x128xf32, #tpu.memory_space<vmem>>, vector<16x128xf32>
    %5 = arith.subf %3, %4 : vector<16x128xf32>
    %cst = arith.constant 9.99999997E-7 : f32
    %6 = vector.broadcast %cst : f32 to vector<16x128xf32>
    %7 = arith.addf %4, %6 : vector<16x128xf32>
    %8 = tpu.reciprocal %7 : vector<16x128xf32> -> vector<16x128xf32>
    %9 = arith.mulf %5, %8 : vector<16x128xf32>
    %10 = arith.mulf %9, %9 : vector<16x128xf32>
    %c0_4 = arith.constant 0 : index
    %c0_5 = arith.constant 0 : index
    %11 = vector.load %arg3[%c0_4, %c0_5] : memref<8x128xf32, #tpu.memory_space<vmem>>, vector<8x128xf32>
    %12 = vector.shape_cast %10 : vector<16x128xf32> to vector<2x8x128xf32>
    %cst_6 = arith.constant dense<0.000000e+00> : vector<8x128xf32>
    %13 = vector.multi_reduction <add>, %12, %cst_6 [0] : vector<2x8x128xf32> to vector<8x128xf32>
    %14 = arith.addf %11, %13 : vector<8x128xf32>
    %c0_7 = arith.constant 0 : index
    %c0_8 = arith.constant 0 : index
    %15 = vector.load %arg3[%c0_7, %c0_8] : memref<8x128xf32, #tpu.memory_space<vmem>>, vector<8x128xf32>
    tpu.vector_store %arg3[%c0_7, %c0_8], %14 {strides = array<i32>} : memref<8x128xf32, #tpu.memory_space<vmem>>, vector<8x128xf32>,
    return
  }
  func.func @transform_0(%arg0: i32) -> (i32, i32) {
    %c0_i32 = arith.constant 0 : i32
    %c0_i32_0 = arith.constant 0 : i32
    return %arg0, %c0_i32 : i32, i32
  }
  func.func @transform_1(%arg0: i32) -> (i32, i32) {
    %c0_i32 = arith.constant 0 : i32
    %c0_i32_0 = arith.constant 0 : i32
    return %arg0, %c0_i32 : i32, i32
  }
  func.func @transform_2(%arg0: i32) -> (i32, i32) {
    %c0_i32 = arith.constant 0 : i32
    %c0_i32_0 = arith.constant 0 : i32
    %c0_i32_1 = arith.constant 0 : i32
    return %c0_i32, %c0_i32_0 : i32, i32
  }
}

</mosaic_0001>

<bundles_post_ra>
// kernel: tpu_custom_call.1
= control target key start
LH: loop header
LB: loop body
LE: loop exit
PB: predicated region body
PF: predicated region fallthrough
CT: control target
= control target key end

     0   :  { %7 = vsyncpa [#allocation3], 0  ;;  %s184_s0 = inlined_call_operand.hbm [shape: f32[16,128], index: 0, kind: input, shape index: {}]   ;;  %s185_s1 = inlined_call_operand.hbm [shape: f32[16,128], index: 1, kind: input, shape index: {}]   ;;  %s186_s2 = inlined_call_operand.hbm [shape: f32[8,128], index: 2, kind: output, shape index: {}]  }
   0x1   :  { %8 = vsyncpa [#allocation6], 0 }
   0x2   :  { %9 = vsyncpa [#allocation4], 0  ;;  %s155_s9 = smov [#allocation2]  }
   0x3   :  { %s15_s10 = sshll.u32 %s155_s9, 4  ;;  %s16_s10 = int_to_ptr.vmem [resolvable:$true] %s15_s10 }
   0x4   :  { %s97_s11 = scalar_lea.vmem %s16_s10, 256  ;;  %p102_p1 = scmp.lt.s32.totalorder %s16_s10, %s16_s10 }
   0x5   :  { %p98_p0 = scmp.ne.s32.totalorder %s16_s10, %s97_s11  ;;  %p103_p2 = scmp.lt.s32.totalorder %s97_s11, %s97_s11 }
   0x7   :  { %p104_p3 = por %p103_p2, %p102_p1 }
   0x9   :  { %p105_p4 = pnand %p104_p3, %p98_p0 }
   0xb   :  { %108 = shalt.err (!%p105_p4)
}
   0xc   :  { %s156_s12 = smov 128   ;;  %s157_s13 = smov 8  }
   0xd   :  { %21 = dma.hbm_to_vmem [thread:$0]  %s184_s0, 256, %s16_s10, [#allocation3], %s156_s12, %s156_s12, %s157_s13  }
   0xe   :  { %s158_s16 = smov [#allocation5]  }
   0xf   :  { %s27_s17 = sshll.u32 %s158_s16, 4  ;;  %s28_s17 = int_to_ptr.vmem [resolvable:$true] %s27_s17 }
  0x10   :  { %s117_s18 = scalar_lea.vmem %s28_s17, 256  ;;  %p122_p6 = scmp.lt.s32.totalorder %s28_s17, %s28_s17 }
  0x11   :  { %p118_p5 = scmp.ne.s32.totalorder %s28_s17, %s117_s18  ;;  %p123_p7 = scmp.lt.s32.totalorder %s117_s18, %s117_s18 }
  0x13   :  { %p124_p8 = por %p123_p7, %p122_p6 }
  0x15   :  { %p125_p9 = pnand %p124_p8, %p118_p5 }
  0x17   :  { %128 = shalt.err (!%p125_p9)
}
  0x18   :  { %33 = dma.hbm_to_vmem [thread:$0]  %s185_s1, 256, %s28_s17, [#allocation6], %s156_s12, %s156_s12, %s157_s13  }
  0x19   :  { %149 = dma.done.wait [#allocation3], 256  }
  0x1a   :  { %150 = vsyncadd [#allocation3], 4294967040 }
  0x1b   :  { %151 = dma.done.wait [#allocation6], 256  }
  0x1c   :  { %152 = vsyncadd [#allocation6], 4294967040  ;;  %v47_v0 = vld [vmem:[#allocation5] sm:$0xff]  ;;  %v48_v1 = vld [vmem:[#allocation5 + $0x8] sm:$0xff]  ;;  %s159_s0 = smov [#allocation7]  }
  0x1d   :  { %v51_v2 = vadd.f32 1e-06, %v47_v0  ;;  %v52_v3 = vadd.f32 1e-06, %v48_v1  ;;  %v45_v4 = vld [vmem:[#allocation2] sm:$0xff]  ;;  %v46_v5 = vld [vmem:[#allocation2 + $0x8] sm:$0xff] }
  0x1e   :  { %v49_v6 = vsub.f32 %v45_v4, %v47_v0  ;;  %v50_v7 = vsub.f32 %v46_v5, %v48_v1  ;;  %s69_s1 = sshll.u32 %s159_s0, 4  ;;  %s70_s1 = int_to_ptr.vmem [resolvable:$true] %s69_s1 }
  0x1f   :  { %85 = vrcp.f32 %v51_v2  ;;  %s129_s21 = scalar_lea.vmem %s70_s1, 128  ;;  %p134_p11 = scmp.lt.s32.totalorder %s70_s1, %s70_s1 }
  0x20   :  { %87 = vrcp.f32 %v52_v3  ;;  %p130_p10 = scmp.ne.s32.totalorder %s70_s1, %s129_s21  ;;  %p135_p12 = scmp.lt.s32.totalorder %s129_s21, %s129_s21 }
  0x22   :  { %p136_p13 = por %p135_p12, %p134_p11 }
  0x24   :  { %p137_p0 = pnand %p136_p13, %p130_p10 }
  0x2c   :  { %v86_v8 = vpop.eup %85 }
  0x2d   :  { %v88_v9 = vpop.eup %87  ;;  %v55_v10 = vmul.f32 %v86_v8, %v49_v6 }
  0x2e   :  { %v56_v11 = vmul.f32 %v88_v9, %v50_v7 }
  0x2f   :  { %v57_v12 = vmul.f32 %v55_v10, %v55_v10 }
  0x30   :  { %v58_v13 = vmul.f32 %v56_v11, %v56_v11 }
  0x32   :  { %v60_v14 = vadd.f32 %v58_v13, %v57_v12 }
  0x34   :  { %62 = vst [vmem:[#allocation7] sm:$0xff] %v60_v14 }
  0x35   :  { %140 = shalt.err (!%p137_p0)
}
  0x36   :  { %72 = dma.vmem_to_hbm [thread:$0]  %s70_s1, 128, %s186_s2, [#allocation4]  }
  0x37   :  { %153 = dma.done.wait [#allocation4], 128  }
  0x38   :  { %154 = vsyncadd [#allocation4], 4294967168 }
  0x39   :  { %76 = vsyncpa [#allocation3], 1 }
  0x3a   :  { %77 = vsyncpa [#allocation6], 1 }
  0x3b   :  { %78 = vsyncpa [#allocation4], 1 }

</bundles_post_ra>
